<compile_context>
chip_gen: v7x
topology: tpu7x:2x2x1
jax: 0.10.0
libtpu: 0.0.40
codegen_flags: <defaults>
</compile_context>

<pallas_src>
import functools

import jax
import jax.numpy as jnp
from jax.experimental import pallas as pl
from jax.experimental.pallas import tpu as pltpu

_LANES = 128


def _round_up(n, m):
    return (n + m - 1) // m * m


# --------------------------------------------------------------- kernel -----

def actor_kernel(x_ref, p_ref, out_ref, *, ns_pad, num_points):
    """One batch tile: x_ref [TB, ns_pad] f32, p_ref [rows, 128] bf16,
    out_ref [TB, 128] f32 (lanes >= num_points hold exact zeros)."""
    # Static, sublane-aligned row offsets into the packed parameter buffer.
    r_w1 = 0
    r_b1 = ns_pad
    r_w2 = ns_pad + 8
    r_b2 = r_w2 + 128
    r_w3 = r_b2 + 8
    r_b3 = r_w3 + 128

    cd = p_ref.dtype
    x = x_ref[...].astype(cd)          # in-kernel f32 -> bf16 cast

    # Layer 1: Linear(num_states, 128) + ReLU.
    h1 = jnp.dot(x, p_ref[r_w1:r_w1 + ns_pad, :],
                 preferred_element_type=jnp.float32)
    h1 = jnp.maximum(h1 + p_ref[r_b1:r_b1 + 1, :], 0.0)

    # Layer 2: Linear(128, 64) + ReLU at padded width 128 (padded cols are
    # exactly zero because their weights/bias are zero).
    h2 = jnp.dot(h1.astype(cd), p_ref[r_w2:r_w2 + 128, :],
                 preferred_element_type=jnp.float32)
    h2 = jnp.maximum(h2 + p_ref[r_b2:r_b2 + 1, :], 0.0)

    # point_head: Linear(64, num_points), also at padded width 128.
    logits = jnp.dot(h2.astype(cd), p_ref[r_w3:r_w3 + 128, :],
                     preferred_element_type=jnp.float32)
    logits = logits + p_ref[r_b3:r_b3 + 1, :]

    # Mask padded lanes to a large negative value BEFORE the softmax so they
    # carry zero probability (exp underflows to 0); keeps the reduction and
    # the store lane-dense at width 128.
    lane = jax.lax.broadcasted_iota(jnp.int32, logits.shape, 1)
    logits = jnp.where(lane < num_points, logits, -1e30)

    m = jnp.max(logits, axis=-1, keepdims=True)
    e = jnp.exp(logits - m)
    denom = jnp.sum(e, axis=-1, keepdims=True)
    inv = 1.0 / denom                  # exact: rows sum to 1 in f32
    out_ref[...] = (e * inv).astype(out_ref.dtype)


# ---------------------------------------------------------- param packing ---

def pack_actor_params(params, compute_dtype=jnp.bfloat16):
    """Pack (w1,b1,w2,b2,w3,b3) into a single [rows, 128] buffer (call ONCE).

    Layout (segments start at multiples of 8 rows, hidden widths padded to
    128 lanes with zeros so in-kernel unpacking needs only row slices):
      [0 : ns_pad]              W1  (num_states x 128, zero-padded rows)
      [ns_pad : ns_pad+8]       b1  (row 0)
      [+8 : +8+128]             W2  (128 x 64, cols 64..127 zero)
      [.. : ..+8]               b2  (row 0, cols 64..127 zero)
      [+8 : +8+128]             W3  (64 x N in top rows, rest zero)
      [.. : ..+8]               b3  (row 0, cols N..127 zero)
    """
    w1, b1, w2, b2, w3, b3 = params
    num_states, h1 = w1.shape          # (NS, 128)
    h2 = w2.shape[1]                   # 64
    num_points = w3.shape[1]
    assert h1 == 128 and h2 <= 128 and num_points <= 128

    ns_pad = _round_up(num_states, 8)
    rows = ns_pad + 8 + 128 + 8 + 128 + 8
    p = jnp.zeros((rows, _LANES), jnp.float32)

    p = p.at[0:num_states, :h1].set(w1)
    p = p.at[ns_pad:ns_pad + 1, :h1].set(b1.reshape(1, h1))
    r_w2 = ns_pad + 8
    p = p.at[r_w2:r_w2 + h1, :h2].set(w2)
    r_b2 = r_w2 + 128
    p = p.at[r_b2:r_b2 + 1, :h2].set(b2.reshape(1, h2))
    r_w3 = r_b2 + 8
    p = p.at[r_w3:r_w3 + h2, :num_points].set(w3)
    r_b3 = r_w3 + 128
    p = p.at[r_b3:r_b3 + 1, :num_points].set(b3.reshape(1, num_points))
    return p.astype(compute_dtype)


# -------------------------------------------------------------- wrapper -----

def actor_forward(x, packed, num_states, num_points, *, block_b=1024):
    """Actor forward pass. `packed` is the output of pack_actor_params().

    Returns (prob_points, None, (None, None)) to match the PyTorch module.
    """
    ns_pad = _round_up(num_states, 8)

    B = x.shape[0]
    TB = min(block_b, _round_up(B, 8))           # batch tile (multiple of 8)
    B_pad = _round_up(B, TB)
    # v7x: keep the grid >= 2 tiles for mid/large batches so the "parallel"
    # batch axis actually shards across both TensorCores.
    if B_pad // TB < 2 and B > 512:
        TB = _round_up(-(-B // 2), 256)
        B_pad = _round_up(B, TB)

    xp = x
    if ns_pad != num_states:
        xp = jnp.pad(xp, ((0, 0), (0, ns_pad - num_states)))
    if B_pad != B:
        xp = jnp.pad(xp, ((0, B_pad - B), (0, 0)))
    # NOTE: no wrapper-side dtype cast; the kernel casts f32 -> bf16 in VMEM.

    grid = (B_pad // TB,)
    kernel = functools.partial(actor_kernel, ns_pad=ns_pad,
                               num_points=num_points)

    cost = pl.CostEstimate(
        flops=int(2 * B_pad * (ns_pad * 128 + 128 * 128 + 128 * 128)),
        transcendentals=int(B_pad * _LANES),
        bytes_accessed=int(B_pad * ns_pad * 4
                           + packed.size * packed.dtype.itemsize
                           + B_pad * _LANES * 4),
    )

    cp_kwargs = dict(dimension_semantics=("parallel",))
    if TB >= 4096:
        cp_kwargs["vmem_limit_bytes"] = 64 * 1024 * 1024

    out = pl.pallas_call(
        kernel,
        out_shape=jax.ShapeDtypeStruct((B_pad, _LANES), jnp.float32),
        grid=grid,
        in_specs=[
            pl.BlockSpec((TB, ns_pad), lambda i: (i, 0)),
            pl.BlockSpec(packed.shape, lambda i: (0, 0)),   # VMEM-resident
        ],
        out_specs=pl.BlockSpec((TB, _LANES), lambda i: (i, 0)),
        compiler_params=pltpu.CompilerParams(**cp_kwargs),
        cost_estimate=cost,
    )(xp, packed)

    # Trim batch padding and padded lanes in the wrapper (cheap XLA slice).
    prob_points = out[:B, :num_points]

    # Match the PyTorch return structure (pmax / num_channels unused in fwd).
    return (prob_points, None, (None, None))


# ----------------------------------------------------- reference & params ---

def actor_reference(x, params, compute_dtype=jnp.bfloat16):
    """Pure-JAX reference with the same bf16-input / f32-accum numerics."""
    w1, b1, w2, b2, w3, b3 = params
    cd = compute_dtype
    h1 = jnp.maximum(
        jnp.dot(x.astype(cd), w1.astype(cd),
                preferred_element_type=jnp.float32) + b1.astype(cd), 0.0)
    h2 = jnp.maximum(
        jnp.dot(h1.astype(cd), w2.astype(cd),
                preferred_element_type=jnp.float32) + b2.astype(cd), 0.0)
    logits = (jnp.dot(h2.astype(cd), w3.astype(cd),
                      preferred_element_type=jnp.float32) + b3.astype(cd))
    return jax.nn.softmax(logits, axis=-1)


def init_actor_params(key, num_states, num_points):
    """Deterministic synthetic parameters (torch-style uniform fan-in init)."""
    def linear_init(k, fan_in, fan_out):
        k_w, k_b = jax.random.split(k)
        bound = 1.0 / jnp.sqrt(fan_in)
        # stored as [in, out] so the kernel does x @ W
        w = jax.random.uniform(k_w, (fan_in, fan_out), jnp.float32, -bound, bound)
        b = jax.random.uniform(k_b, (1, fan_out), jnp.float32, -bound, bound)
        return w, b

    k1, k2, k3 = jax.random.split(key, 3)
    w1, b1 = linear_init(k1, num_states, 128)
    w2, b2 = linear_init(k2, 128, 64)
    w3, b3 = linear_init(k3, 64, num_points)
    return (w1, b1, w2, b2, w3, b3)


if __name__ == "__main__":
    # Small shapes consistent with the module: batch=8, num_states=32,
    # num_points=16 (num_channels / pmax are unused in the forward pass).
    B = 8
    num_states = 32
    num_points = 16

    key = jax.random.PRNGKey(0)
    k_params, k_x = jax.random.split(key)

    params = init_actor_params(k_params, num_states, num_points)
    x = jax.random.normal(k_x, (B, num_states), jnp.float32)

    # Pack + cast the parameters ONCE (hoisted out of the per-call path).
    packed = pack_actor_params(params)

    prob_points, _, _ = actor_forward(x, packed, num_states, num_points)
    prob_points = jax.block_until_ready(prob_points)

    # Correctness checks: shape, row sums, and match vs. pure-JAX reference.
    assert prob_points.shape == (B, num_points)
    row_sums = jnp.sum(prob_points, axis=-1)
    assert bool(jnp.all(jnp.abs(row_sums - 1.0) < 2e-3))
    ref = actor_reference(x, params)
    assert bool(jnp.all(jnp.abs(prob_points - ref) < 2e-3))

    print("KERNEL_OK")
</pallas_src>

<mosaic_0001>
module attributes {stable_mosaic.version = 11 : i64} {
  func.func @actor_kernel(%arg0: i32, %arg1: memref<8x32xf32, #tpu.memory_space<vmem>>, %arg2: memref<312x128xbf16, #tpu.memory_space<vmem>>, %arg3: memref<8x128xf32, #tpu.memory_space<vmem>>) attributes {dimension_semantics = [#tpu.dimension_semantics<parallel>], iteration_bounds = array<i64: 1>, scalar_prefetch = 0 : i64, scratch_operands = 0 : i64, tpu.core_type = #tpu.core_type<tc>, window_params = [{transform_indices = @transform_0, window_bounds = array<i64: 8, 32>}, {pipeline_mode = #tpu.pipeline_mode<synchronous>, transform_indices = @transform_1, window_bounds = array<i64: 312, 128>}, {transform_indices = @transform_2, window_bounds = array<i64: 8, 128>}]} {
    %c0 = arith.constant 0 : index
    %c0_0 = arith.constant 0 : index
    %0 = vector.load %arg1[%c0, %c0_0] : memref<8x32xf32, #tpu.memory_space<vmem>>, vector<8x32xf32>
    %1 = arith.truncf %0 : vector<8x32xf32> to vector<8x32xbf16>
    %c0_1 = arith.constant 0 : index
    %c0_2 = arith.constant 0 : index
    %2 = vector.load %arg2[%c0_1, %c0_2] : memref<312x128xbf16, #tpu.memory_space<vmem>>, vector<32x128xbf16>
    %cst = arith.constant dense<0.000000e+00> : vector<8x128xf32>
    %3 = tpu.matmul %1, %2, %cst {dimension_numbers = #tpu.dot_dimension_numbers<[1], [0], [0], [1], [0, 0, 1, 1], [], []>} : vector<8x32xbf16>, vector<32x128xbf16>, vector<8x128xf32> -> vector<8x128xf32>
    %c32 = arith.constant 32 : index
    %c0_3 = arith.constant 0 : index
    %4 = vector.load %arg2[%c32, %c0_3] : memref<312x128xbf16, #tpu.memory_space<vmem>>, vector<1x128xbf16>
    %5 = arith.extf %4 : vector<1x128xbf16> to vector<1x128xf32>
    %6 = vector.broadcast %5 : vector<1x128xf32> to vector<8x128xf32>
    %7 = arith.addf %3, %6 : vector<8x128xf32>
    %cst_4 = arith.constant 0.000000e+00 : f32
    %8 = vector.broadcast %cst_4 : f32 to vector<8x128xf32>
    %9 = arith.maximumf %7, %8 : vector<8x128xf32>
    %10 = arith.truncf %9 : vector<8x128xf32> to vector<8x128xbf16>
    %c40 = arith.constant 40 : index
    %c0_5 = arith.constant 0 : index
    %11 = vector.load %arg2[%c40, %c0_5] : memref<312x128xbf16, #tpu.memory_space<vmem>>, vector<128x128xbf16>
    %cst_6 = arith.constant dense<0.000000e+00> : vector<8x128xf32>
    %12 = tpu.matmul %10, %11, %cst_6 {dimension_numbers = #tpu.dot_dimension_numbers<[1], [0], [0], [1], [0, 0, 1, 1], [], []>} : vector<8x128xbf16>, vector<128x128xbf16>, vector<8x128xf32> -> vector<8x128xf32>
    %c168 = arith.constant 168 : index
    %c0_7 = arith.constant 0 : index
    %13 = vector.load %arg2[%c168, %c0_7] : memref<312x128xbf16, #tpu.memory_space<vmem>>, vector<1x128xbf16>
    %14 = arith.extf %13 : vector<1x128xbf16> to vector<1x128xf32>
    %15 = vector.broadcast %14 : vector<1x128xf32> to vector<8x128xf32>
    %16 = arith.addf %12, %15 : vector<8x128xf32>
    %cst_8 = arith.constant 0.000000e+00 : f32
    %17 = vector.broadcast %cst_8 : f32 to vector<8x128xf32>
    %18 = arith.maximumf %16, %17 : vector<8x128xf32>
    %19 = arith.truncf %18 : vector<8x128xf32> to vector<8x128xbf16>
    %c176 = arith.constant 176 : index
    %c0_9 = arith.constant 0 : index
    %20 = vector.load %arg2[%c176, %c0_9] : memref<312x128xbf16, #tpu.memory_space<vmem>>, vector<128x128xbf16>
    %cst_10 = arith.constant dense<0.000000e+00> : vector<8x128xf32>
    %21 = tpu.matmul %19, %20, %cst_10 {dimension_numbers = #tpu.dot_dimension_numbers<[1], [0], [0], [1], [0, 0, 1, 1], [], []>} : vector<8x128xbf16>, vector<128x128xbf16>, vector<8x128xf32> -> vector<8x128xf32>
    %c304 = arith.constant 304 : index
    %c0_11 = arith.constant 0 : index
    %22 = vector.load %arg2[%c304, %c0_11] : memref<312x128xbf16, #tpu.memory_space<vmem>>, vector<1x128xbf16>
    %23 = arith.extf %22 : vector<1x128xbf16> to vector<1x128xf32>
    %24 = vector.broadcast %23 : vector<1x128xf32> to vector<8x128xf32>
    %25 = arith.addf %21, %24 : vector<8x128xf32>
    %26 = tpu.iota {dimensions = array<i32: 1>} : vector<8x128xi32>
    %c16_i32 = arith.constant 16 : i32
    %27 = vector.broadcast %c16_i32 : i32 to vector<8x128xi32>
    %28 = arith.cmpi slt, %26, %27 : vector<8x128xi32>
    %cst_12 = arith.constant -1.000000e+30 : f32
    %29 = vector.broadcast %cst_12 : f32 to vector<8x128xf32>
    %30 = arith.select %28, %25, %29 : vector<8x128xi1>, vector<8x128xf32>
    %cst_13 = arith.constant dense<0xFF800000> : vector<8xf32>
    %31 = vector.multi_reduction <maximumf>, %30, %cst_13 [1] : vector<8x128xf32> to vector<8xf32>
    %32 = vector.shape_cast %31 : vector<8xf32> to vector<8x1xf32>
    %33 = vector.broadcast %32 : vector<8x1xf32> to vector<8x128xf32>
    %34 = arith.subf %30, %33 : vector<8x128xf32>
    %35 = math.exp %34 : vector<8x128xf32>
    %cst_14 = arith.constant dense<0.000000e+00> : vector<8xf32>
    %36 = vector.multi_reduction <add>, %35, %cst_14 [1] : vector<8x128xf32> to vector<8xf32>
    %37 = vector.shape_cast %36 : vector<8xf32> to vector<8x1xf32>
    %cst_15 = arith.constant 1.000000e+00 : f32
    %38 = vector.broadcast %cst_15 : f32 to vector<8x1xf32>
    %39 = arith.divf %38, %37 : vector<8x1xf32>
    %40 = vector.broadcast %39 : vector<8x1xf32> to vector<8x128xf32>
    %41 = arith.mulf %35, %40 : vector<8x128xf32>
    %c0_16 = arith.constant 0 : index
    %c0_17 = arith.constant 0 : index
    %42 = vector.load %arg3[%c0_16, %c0_17] : memref<8x128xf32, #tpu.memory_space<vmem>>, vector<8x128xf32>
    tpu.vector_store %arg3[%c0_16, %c0_17], %41 {strides = array<i32>} : memref<8x128xf32, #tpu.memory_space<vmem>>, vector<8x128xf32>,
    return
  }
  func.func @transform_0(%arg0: i32) -> (i32, i32) {
    %c0_i32 = arith.constant 0 : i32
    %c0_i32_0 = arith.constant 0 : i32
    return %arg0, %c0_i32 : i32, i32
  }
  func.func @transform_1(%arg0: i32) -> (i32, i32) {
    %c0_i32 = arith.constant 0 : i32
    %c0_i32_0 = arith.constant 0 : i32
    %c0_i32_1 = arith.constant 0 : i32
    return %c0_i32, %c0_i32_0 : i32, i32
  }
  func.func @transform_2(%arg0: i32) -> (i32, i32) {
    %c0_i32 = arith.constant 0 : i32
    %c0_i32_0 = arith.constant 0 : i32
    return %arg0, %c0_i32 : i32, i32
  }
}

</mosaic_0001>

<bundles_post_ra>
// kernel: tpu_custom_call.1
= control target key start
LH: loop header
LB: loop body
LE: loop exit
PB: predicated region body
PF: predicated region fallthrough
CT: control target
= control target key end

     0   :  { %7 = vsyncpa [#allocation3], 0  ;;  %s640_s0 = inlined_call_operand.hbm [shape: f32[8,32], index: 0, kind: input, shape index: {}]   ;;  %s641_s1 = inlined_call_operand.hbm [shape: bf16[312,128], index: 1, kind: input, shape index: {}]   ;;  %s642_s2 = inlined_call_operand.hbm [shape: f32[8,128], index: 2, kind: output, shape index: {}]  }
   0x1   :  { %8 = vsyncpa [#allocation6], 0 }
   0x2   :  { %9 = vsyncpa [#allocation4], 0  ;;  %s551_s9 = smov [#allocation2]   ;;  %s552_s11 = smov [#allocation5]  }
   0x3   :  { %s16_s10 = sshll.u32 %s551_s9, 4  ;;  %s25_s12 = sshll.u32 %s552_s11, 4  ;;  %s17_s10 = int_to_ptr.vmem [resolvable:$true] %s16_s10  ;;  %s573_s12 = int_to_ptr.vmem [resolvable:$true] %s25_s12 }
   0x4   :  { %s479_s15 = scalar_lea.hbm %s640_s0, 128 }
   0x5   :  { %p480_p0 = scmp.ne.s32.totalorder %s640_s0, %s479_s15  ;;  %p483_p1 = scmp.lt.u32.totalorder %s479_s15, %s640_s0 }
   0x7   :  { %p485_p2 = pnand %p483_p1, %p480_p0 }
   0x9   :  { %488 = shalt.err (!%p485_p2)
}
   0xa   :  { %s489_s20 = scalar_lea.vmem %s17_s10, 128  ;;  %p494_p4 = scmp.lt.s32.totalorder %s17_s10, %s17_s10 }
   0xb   :  { %p490_p3 = scmp.ne.s32.totalorder %s17_s10, %s489_s20  ;;  %p495_p5 = scmp.lt.s32.totalorder %s489_s20, %s489_s20 }
   0xd   :  { %p496_p6 = por %p495_p5, %p494_p4 }
   0xf   :  { %p497_p7 = pnand %p496_p6, %p490_p3 }
  0x11   :  { %500 = shalt.err (!%p497_p7)
}
  0x12   :  { %19 = dma.hbm_to_vmem [thread:$0]  %s640_s0, 128, %s17_s10, [#allocation3]  }
  0x13   :  { %s501_s25 = scalar_lea.hbm %s641_s1, 2496 }
  0x14   :  { %p502_p8 = scmp.ne.s32.totalorder %s641_s1, %s501_s25  ;;  %p505_p9 = scmp.lt.u32.totalorder %s501_s25, %s641_s1 }
  0x16   :  { %p507_p10 = pnand %p505_p9, %p502_p8 }
  0x18   :  { %510 = shalt.err (!%p507_p10)
}
  0x19   :  { %s511_s30 = scalar_lea.vmem %s573_s12, 2496  ;;  %p516_p12 = scmp.lt.s32.totalorder %s573_s12, %s573_s12 }
  0x1a   :  { %p512_p11 = scmp.ne.s32.totalorder %s573_s12, %s511_s30  ;;  %p517_p13 = scmp.lt.s32.totalorder %s511_s30, %s511_s30 }
  0x1c   :  { %p518_p0 = por %p517_p13, %p516_p12 }
  0x1e   :  { %p519_p1 = pnand %p518_p0, %p512_p11 }
  0x20   :  { %522 = shalt.err (!%p519_p1)
}
  0x21   :  { %s553_s0 = smov 64   ;;  %s554_s3 = smov 4  }
  0x22   :  { %31 = dma.hbm_to_vmem [thread:$0]  %s641_s1, 2496, %s573_s12, [#allocation6], %s553_s0, %s553_s0, %s554_s3  }
  0x23   :  { %545 = dma.done.wait [#allocation3], 128  }
  0x24   :  { %546 = vsyncadd [#allocation3], 4294967168 }
  0x25   :  { %547 = dma.done.wait [#allocation6], 2496  }
  0x26   :  { %548 = vsyncadd [#allocation6], 4294964800  ;;  %v555_v0 = vmov 0.0   ;;  %vm556_vm0 = vmmov 0   ;;  %v457_v1 = vld [vmem:[#allocation5] sm:$0xff]   ;;  %v458_v2 = vld [vmem:[#allocation5 + $0x8] sm:$0xff]   ;;  %v47_v19 = vlaneseq }
  0x27   :  { %402 = vmatprep.subr.bf16.mxu0 %v555_v0  ;;  %406 = vmatprep.mubr.msk.bf16.mxu0 %vm556_vm0, %v555_v0  ;;  %v39_v3 = vld [vmem:[#allocation2] sm:$0xff]  ;;  %vm63_vm1 = vcmask 261120   ;;  %v461_v7 = vld [vmem:[#allocation5 + $0x24] sm:$0xff]   ;;  %v462_v8 = vld [vmem:[#allocation5 + $0x2c] sm:$0xff]   ;;  %s557_s1 = smov [#allocation7]  }
  0x28   :  { %410 = vmatprep.subr.bf16.mxu1 %v555_v0  ;;  %426 = vmatprep.mubr.msk.bf16.mxu1 %vm556_vm0, %v555_v0  ;;  %v459_v4 = vld [vmem:[#allocation5 + $0x14] sm:$0xff]   ;;  %v40_v5 = vpack.c.bf16 %v39_v3, %v39_v3  ;;  %v460_v6 = vld [vmem:[#allocation5 + $0x1c] sm:$0xff]   ;;  %v465_v11 = vld [vmem:[#allocation5 + $0x44] sm:$0xff]   ;;  %v48_v20 = vshrl.u32 %v47_v19, 7  ;;  %v332_v46 = vand.u32 127, %v47_v19  ;;  %s352_s6 = sshll.u32 %s557_s1, 4  ;;  %s353_s6 = int_to_ptr.vmem [resolvable:$true] %s352_s6 }
  0x29   :  { %403 = vmatpush3.bf16.msra.mxu0 %v457_v1  ;;  %411 = vmatpush3.bf16.msra.mxu1 %v459_v4  ;;  %v463_v9 = vld [vmem:[#allocation5 + $0x34] sm:$0xff]   ;;  %v464_v10 = vld [vmem:[#allocation5 + $0x3c] sm:$0xff]   ;;  %v466_v12 = vld [vmem:[#allocation5 + $0x4c] sm:$0xff]   ;;  %s523_s7 = scalar_lea.vmem %s353_s6, 128  ;;  %p528_p3 = scmp.lt.s32.totalorder %s353_s6, %s353_s6 }
  0x2a   :  { %404 = vmatprep.subr.bf16.mxu0 %v555_v0  ;;  %412 = vmatprep.subr.bf16.mxu1 %v555_v0  ;;  %v467_v13 = vld [vmem:[#allocation5 + $0x58] sm:$0xff]   ;;  %v468_v14 = vld [vmem:[#allocation5 + $0x60] sm:$0xff]   ;;  %v469_v15 = vld [vmem:[#allocation5 + $0x68] sm:$0xff]   ;;  %v49_v23 = vsub.s32 0, %v48_v20  ;;  %vm333_vm2 = vcmp.lt.s32.totalorder %v332_v46, 16  ;;  %p524_p2 = scmp.ne.s32.totalorder %s353_s6, %s523_s7  ;;  %p529_p4 = scmp.lt.s32.totalorder %s523_s7, %s523_s7 }
  0x2b   :  { %v470_v16 = vld [vmem:[#allocation5 + $0x70] sm:$0xff]   ;;  %v471_v17 = vld [vmem:[#allocation5 + $0x78] sm:$0xff]   ;;  %v472_v18 = vld [vmem:[#allocation5 + $0x80] sm:$0xff]  }
  0x2c   :  { %v45_v21 = vld [vmem:[#allocation5 + $0x10] sm:$0x1]  ;;  %v473_v32 = vld [vmem:[#allocation5 + $0x88] sm:$0xff]   ;;  %v125_v34 = vld [vmem:[#allocation5 + $0x54] sm:$0x1]  ;;  %p530_p5 = por %p529_p4, %p528_p3 }
  0x2d   :  { %405 = vmatpush3.bf16.msra.mxu0 %v458_v2  ;;  %413 = vmatpush3.bf16.msra.mxu1 %v460_v6  ;;  %v46_v22 = vunpack.c.l.bf16 %v45_v21  ;;  %v474_v33 = vld [vmem:[#allocation5 + $0x90] sm:$0xff]   ;;  %v126_v35 = vunpack.c.l.bf16 %v125_v34  ;;  %v237_v44 = vld [vmem:[#allocation5 + $0x98] sm:$0x1] }
  0x2e   :  { %430 = vmatprep.subr.bf16.mxu0 %v555_v0  ;;  %414 = vmatprep.subr.bf16.mxu1 %v555_v0  ;;  %v238_v45 = vunpack.c.l.bf16 %v237_v44  ;;  %p531_p6 = pnand %p530_p5, %p524_p2 }
  0x2f   :  { %v50_v24 = vrot.slane %v46_v22, %v49_v23  ;;  %v130_v36 = vrot.slane %v126_v35, %v49_v23 }
  0x30   :  { %407 = vmatmul.mubr.msk.bf16.vlgmr.msra.gmra.mrb[0].mxu0 %vm63_vm1, %v40_v5  ;;  %v242_v47 = vrot.slane %v238_v45, %v49_v23 }
  0x31   :  { %446 = vmatprep.mubr.msk.bf16.mxu0 %vm556_vm0, %v555_v0  ;;  %415 = vmatpush3.bf16.msra.mxu1 %v461_v7 }
  0x32   :  { %416 = vmatprep.subr.bf16.mxu1 %v555_v0  ;;  %431 = vmatpush3.bf16.msra.mxu0 %v467_v13 }
  0x33   :  { %432 = vmatprep.subr.bf16.mxu0 %v555_v0 }
  0x35   :  { %417 = vmatpush3.bf16.msra.mxu1 %v462_v8 }
  0x36   :  { %418 = vmatprep.subr.bf16.mxu1 %v555_v0  ;;  %433 = vmatpush3.bf16.msra.mxu0 %v468_v14 }
  0x37   :  { %434 = vmatprep.subr.bf16.mxu0 %v555_v0 }
  0x39   :  { %419 = vmatpush3.bf16.msra.mxu1 %v463_v9 }
  0x3a   :  { %420 = vmatprep.subr.bf16.mxu1 %v555_v0  ;;  %435 = vmatpush3.bf16.msra.mxu0 %v469_v15 }
  0x3b   :  { %436 = vmatprep.subr.bf16.mxu0 %v555_v0 }
  0x3d   :  { %421 = vmatpush3.bf16.msra.mxu1 %v464_v10 }
  0x3e   :  { %422 = vmatprep.subr.bf16.mxu1 %v555_v0  ;;  %437 = vmatpush3.bf16.msra.mxu0 %v470_v16 }
  0x3f   :  { %438 = vmatprep.subr.bf16.mxu0 %v555_v0 }
  0x41   :  { %423 = vmatpush3.bf16.msra.mxu1 %v465_v11 }
  0x42   :  { %424 = vmatprep.subr.bf16.mxu1 %v555_v0  ;;  %439 = vmatpush3.bf16.msra.mxu0 %v471_v17 }
  0x43   :  { %440 = vmatprep.subr.bf16.mxu0 %v555_v0 }
  0x45   :  { %425 = vmatpush3.bf16.msra.mxu1 %v466_v12 }
  0x46   :  { %441 = vmatpush3.bf16.msra.mxu0 %v472_v18 }
  0x47   :  { %442 = vmatprep.subr.bf16.mxu0 %v555_v0 }
  0x4a   :  { %443 = vmatpush3.bf16.msra.mxu0 %v473_v32 }
  0x4b   :  { %444 = vmatprep.subr.bf16.mxu0 %v555_v0 }
  0x4e   :  { %445 = vmatpush3.bf16.msra.mxu0 %v474_v33 }
 0x103   :  { %v101_v25 = vpop.f32.mrb[0].mxu0 }
 0x104   :  { %v102_v26 = vadd.f32 %v101_v25, %v50_v24  ;;  %v408_v27 = vpop.f32.mrb[1].mxu0 }
 0x105   :  { %v104_v28 = vpop.f32.mrb[2].mxu0 }
 0x106   :  { %v107_v29 = vmax.f32 %v102_v26, 0.0  ;;  %v409_v30 = vpop.f32.mrb[3].mxu0 }
 0x108   :  { %v108_v31 = vpack.c.bf16 %v107_v29, %v107_v29 }
 0x10a   :  { %427 = vmatmul.mubr.bf16.vlgmr.msra.gmra.mrb[0].mxu1 %v108_v31 }
 0x1dd   :  { %v213_v37 = vpop.f32.mrb[0].mxu1 }
 0x1de   :  { %v214_v38 = vadd.f32 %v213_v37, %v130_v36  ;;  %v428_v39 = vpop.f32.mrb[1].mxu1 }
 0x1df   :  { %v216_v40 = vpop.f32.mrb[2].mxu1 }
 0x1e0   :  { %v219_v41 = vmax.f32 %v214_v38, 0.0  ;;  %v429_v42 = vpop.f32.mrb[3].mxu1 }
 0x1e2   :  { %v220_v43 = vpack.c.bf16 %v219_v41, %v219_v41 }
 0x1e4   :  { %447 = vmatmul.mubr.bf16.vlgmr.msra.gmra.mrb[4].mxu0 %v220_v43 }
 0x2b7   :  { %v325_v48 = vpop.f32.mrb[4].mxu0 }
 0x2b8   :  { %v326_v49 = vadd.f32 %v325_v48, %v242_v47  ;;  %v448_v50 = vpop.f32.mrb[5].mxu0 }
 0x2b9   :  { %v328_v51 = vpop.f32.mrb[6].mxu0 }
 0x2ba   :  { %v449_v52 = vpop.f32.mrb[7].mxu0  ;;  %v334_v53 = vsel %vm333_vm2, %v326_v49, -1e+30 }
 0x2bb   :  { %335 = vmax.xlane.f32.xlu0 %v334_v53 }
 0x348   :  { %v336_v54 = vpop.xlane.xlu0 %335 }
 0x349   :  { %v337_v55 = vsub.f32 %v334_v53, %v336_v54 }
 0x34b   :  { %v338_v56 = vmul.f32 1.442695, %v337_v55 }
 0x34d   :  { %475 = vpow2.f32 %v338_v56 }
 0x357   :  { %v476_v57 = vpop.eup %475 }
 0x358   :  { %340 = vadd.xlane.f32.xlu0 %v476_v57 }
 0x3e5   :  { %v341_v58 = vpop.xlane.xlu0 %340 }
 0x3e6   :  { %477 = vrcp.f32 %v341_v58 }
 0x3f0   :  { %v478_v59 = vpop.eup %477 }
 0x3f1   :  { %v344_v60 = vmul.f32 %v478_v59, %v476_v57 }
 0x3f3   :  { %345 = vst [vmem:[#allocation7] sm:$0xff] %v344_v60 }
 0x3f4   :  { %534 = shalt.err (!%p531_p6)
}
 0x3f5   :  { %s535_s10 = scalar_lea.hbm %s642_s2, 128 }
 0x3f6   :  { %p536_p7 = scmp.ne.s32.totalorder %s642_s2, %s535_s10  ;;  %p539_p8 = scmp.lt.u32.totalorder %s535_s10, %s642_s2 }
 0x3f8   :  { %p541_p9 = pnand %p539_p8, %p536_p7 }
 0x3fa   :  { %544 = shalt.err (!%p541_p9)
}
 0x3fb   :  { %355 = dma.vmem_to_hbm [thread:$0]  %s353_s6, 128, %s642_s2, [#allocation4]  }
 0x3fc   :  { %549 = dma.done.wait [#allocation4], 128  }
 0x3fd   :  { %550 = vsyncadd [#allocation4], 4294967168 }
 0x3fe   :  { %359 = vsyncpa [#allocation3], 1 }
 0x3ff   :  { %360 = vsyncpa [#allocation6], 1 }
 0x400   :  { %361 = vsyncpa [#allocation4], 1 }

</bundles_post_ra>
